<compile_context>
chip_gen: v5e
topology: v5e:2x2
jax: 0.10.0
libtpu: 0.0.40
codegen_flags: <defaults>
</compile_context>

<pallas_src>
import math

import jax
import jax.numpy as jnp
from jax.experimental import pallas as pl
from jax.experimental.pallas import tpu as pltpu


def _round_up(x: int, m: int) -> int:
    return (x + m - 1) // m * m


def _sin_kernel(freq_ref, x_ref, o_ref):
    """o = sin(freq * x) on one (TL, TW) tile; compute in f32, cast on store.

    freq_ref : (1, TW)  f32 frequency row (broadcast over sublanes)
    x_ref    : (TL, TW) input tile
    o_ref    : (TL, TW) output tile
    """
    xf = x_ref[...].astype(jnp.float32)
    o_ref[...] = jnp.sin(xf * freq_ref[...]).astype(o_ref.dtype)


def sin_forward(x: jax.Array, freq: jax.Array, *, target_tile_bytes: int = 4 << 20) -> jax.Array:
    """sin(freq * x) for x: (B, L, D), freq: (1, D). Returns (B, L, D)."""
    B, L, D = x.shape
    assert freq.shape == (1, D)
    dtype = x.dtype
    itemsize = jnp.dtype(dtype).itemsize
    sublane = max(8, 32 // itemsize)          # 8 (f32) / 16 (bf16) / 32 (int8, fp8)
    rows = B * L
    n_total = rows * D

    freq_f32 = freq.astype(jnp.float32)

    # ---- choose layout (always a free, copy-less reshape of x) ----
    g = math.gcd(D, 128)
    k = 128 // g
    w = k * D                                 # lcm(D, 128): lane-dense packed row width
    packed_ok = (rows % k == 0) and (w * itemsize * sublane <= target_tile_bytes)

    if packed_ok:
        # Lane-dense packing: column c of the packed layout maps to feature c % D.
        x2d = x.reshape(n_total // w, w)
        freq_row = jnp.tile(freq_f32, (1, k)) if k > 1 else freq_f32
    else:
        # Plain (B*L, D) rows; block last dim == full array dim is always legal.
        x2d = x.reshape(rows, D)
        freq_row = freq_f32

    R, W = x2d.shape

    # ---- column tile: full width if it fits one sublane-height tile, else 128-multiples ----
    if _round_up(W, 128) * itemsize * sublane <= target_tile_bytes:
        tw = W
    else:
        tw = max(128, (target_tile_bytes // (sublane * itemsize)) // 128 * 128)

    # ---- row tile: ~target_tile_bytes per in/out tile, sublane-rounded ----
    bytes_per_tile_row = _round_up(tw, 128) * itemsize      # VMEM footprint of one tile row
    tl = max(sublane, (target_tile_bytes // bytes_per_tile_row) // sublane * sublane)
    tl = min(tl, _round_up(R, sublane))
    # Keep >= 2 grid steps when there is enough work, so both v7x TCs get work.
    if R >= 2 * sublane:
        tl = min(tl, _round_up(pl.cdiv(R, 2), sublane))

    grid = (pl.cdiv(R, tl), pl.cdiv(W, tw))

    out2d = pl.pallas_call(
        _sin_kernel,
        grid=grid,
        in_specs=[
            # Constant row-block index -> the pipeline does not re-DMA freq per row step.
            pl.BlockSpec((1, tw), lambda i, j: (0, j)),
            pl.BlockSpec((tl, tw), lambda i, j: (i, j)),
        ],
        out_specs=pl.BlockSpec((tl, tw), lambda i, j: (i, j)),
        out_shape=jax.ShapeDtypeStruct((R, W), dtype),
        compiler_params=pltpu.CompilerParams(
            dimension_semantics=("parallel", "parallel"),
            # 4 double-buffered ~4 MiB tiles + headroom; under every generation's
            # scoped-VMEM ceiling (v5e 16 MiB default is raised here; v7x 32 MiB).
            vmem_limit_bytes=28 << 20,
        ),
        cost_estimate=pl.CostEstimate(
            flops=n_total,
            transcendentals=n_total,
            bytes_accessed=2 * n_total * itemsize,
        ),
    )(freq_row, x2d)

    return out2d.reshape(B, L, D)


def _reference(x, freq):
    # fp32-parameter PyTorch semantics: compute in f32, cast back to x.dtype.
    return jnp.sin(freq.astype(jnp.float32) * x.astype(jnp.float32)).astype(x.dtype)


if __name__ == "__main__":
    key = jax.random.PRNGKey(0)
    freq0 = 10.0

    # Case 1: small shape consistent with the module (packed lane-dense path, no copies).
    B, L, D = 2, 16, 32
    x = jax.random.normal(key, (B, L, D), dtype=jnp.float32)
    freq = freq0 * jnp.ones((1, D), dtype=jnp.float32)   # Parameter init: freq * ones(1, dim)
    y = jax.block_until_ready(sin_forward(x, freq))
    assert y.shape == (B, L, D)
    assert jnp.allclose(y, _reference(x, freq), atol=1e-6, rtol=1e-6)

    # Case 2: awkward (non-128-divisible) D -> un-packed fallback, 2-step row grid, no pad/slice.
    B2, L2, D2 = 2, 24, 33
    x2 = jax.random.normal(jax.random.PRNGKey(0), (B2, L2, D2), dtype=jnp.float32)
    freq2 = freq0 * jnp.ones((1, D2), dtype=jnp.float32)
    y2 = jax.block_until_ready(sin_forward(x2, freq2))
    assert y2.shape == (B2, L2, D2)
    assert jnp.allclose(y2, _reference(x2, freq2), atol=1e-6, rtol=1e-6)

    # Case 3: bf16 activations (16-row sublane rounding, f32 compute, cast on store).
    B3, L3, D3 = 2, 16, 256
    x3 = jax.random.normal(jax.random.PRNGKey(0), (B3, L3, D3), dtype=jnp.bfloat16)
    freq3 = freq0 * jnp.ones((1, D3), dtype=jnp.float32)
    y3 = jax.block_until_ready(sin_forward(x3, freq3))
    assert y3.shape == (B3, L3, D3)
    assert jnp.allclose(y3.astype(jnp.float32), _reference(x3, freq3).astype(jnp.float32),
                        atol=1e-2, rtol=1e-2)

    print("KERNEL_OK")
</pallas_src>

<mosaic_0001>
module attributes {stable_mosaic.version = 11 : i64} {
  func.func @_sin_kernel(%arg0: i32, %arg1: i32, %arg2: memref<1x128xf32, #tpu.memory_space<vmem>>, %arg3: memref<8x128xf32, #tpu.memory_space<vmem>>, %arg4: memref<8x128xf32, #tpu.memory_space<vmem>>) attributes {dimension_semantics = [#tpu.dimension_semantics<parallel>, #tpu.dimension_semantics<parallel>], iteration_bounds = array<i64: 1, 1>, scalar_prefetch = 0 : i64, scratch_operands = 0 : i64, tpu.core_type = #tpu.core_type<tc>, window_params = [{transform_indices = @transform_0, window_bounds = array<i64: 1, 128>}, {transform_indices = @transform_1, window_bounds = array<i64: 8, 128>}, {transform_indices = @transform_2, window_bounds = array<i64: 8, 128>}]} {
    %c0 = arith.constant 0 : index
    %c0_0 = arith.constant 0 : index
    %0 = vector.load %arg3[%c0, %c0_0] : memref<8x128xf32, #tpu.memory_space<vmem>>, vector<8x128xf32>
    %c0_1 = arith.constant 0 : index
    %c0_2 = arith.constant 0 : index
    %1 = vector.load %arg2[%c0_1, %c0_2] : memref<1x128xf32, #tpu.memory_space<vmem>>, vector<1x128xf32>
    %2 = vector.broadcast %1 : vector<1x128xf32> to vector<8x128xf32>
    %3 = arith.mulf %0, %2 : vector<8x128xf32>
    %4 = math.sin %3 : vector<8x128xf32>
    %c0_3 = arith.constant 0 : index
    %c0_4 = arith.constant 0 : index
    %5 = vector.load %arg4[%c0_3, %c0_4] : memref<8x128xf32, #tpu.memory_space<vmem>>, vector<8x128xf32>
    tpu.vector_store %arg4[%c0_3, %c0_4], %4 {strides = array<i32>} : memref<8x128xf32, #tpu.memory_space<vmem>>, vector<8x128xf32>,
    return
  }
  func.func @transform_0(%arg0: i32, %arg1: i32) -> (i32, i32) {
    %c0_i32 = arith.constant 0 : i32
    %c0_i32_0 = arith.constant 0 : i32
    return %c0_i32, %arg1 : i32, i32
  }
  func.func @transform_1(%arg0: i32, %arg1: i32) -> (i32, i32) {
    %c0_i32 = arith.constant 0 : i32
    return %arg0, %arg1 : i32, i32
  }
  func.func @transform_2(%arg0: i32, %arg1: i32) -> (i32, i32) {
    %c0_i32 = arith.constant 0 : i32
    return %arg0, %arg1 : i32, i32
  }
}

</mosaic_0001>

<bundles_post_ra>
// kernel: tpu_custom_call.1
= control target key start
LH: loop header
LB: loop body
LE: loop exit
PB: predicated region body
PF: predicated region fallthrough
CT: control target
= control target key end

     0   :  { %7 = vsyncpa [#allocation3], 0  ;;  %s392_s0 = inlined_call_operand.hbm [shape: f32[1,128], index: 0, kind: input, shape index: {}]   ;;  %s393_s1 = inlined_call_operand.hbm [shape: f32[8,128], index: 1, kind: input, shape index: {}]   ;;  %s394_s2 = inlined_call_operand.hbm [shape: f32[8,128], index: 2, kind: output, shape index: {}]  }
   0x1   :  { %8 = vsyncpa [#allocation6], 0 }
   0x2   :  { %9 = vsyncpa [#allocation4], 0  ;;  %s15_s11 = sshll.u32 %s392_s0, 4  ;;  %s312_s12 = smov [#allocation2]   ;;  %s16_s11 = int_to_ptr.hbm [resolvable:$true] %s15_s11 }
   0x3   :  { %s17_s13 = sshll.u32 %s312_s12, 4  ;;  %s26_s16 = sshll.u32 %s393_s1, 4  ;;  %s18_s13 = int_to_ptr.vmem [resolvable:$true] %s17_s13  ;;  %s27_s16 = int_to_ptr.hbm [resolvable:$true] %s26_s16 }
   0x4   :  { %20 = dma.hbm_to_vmem [thread:$0]  %s16_s11, 16, %s18_s13, [#allocation3]  }
   0x5   :  { %s313_s17 = smov [#allocation5]  }
   0x6   :  { %s28_s18 = sshll.u32 %s313_s17, 4  ;;  %s29_s18 = int_to_ptr.vmem [resolvable:$true] %s28_s18 }
   0x7   :  { %31 = dma.hbm_to_vmem [thread:$0]  %s27_s16, 128, %s29_s18, [#allocation6]  }
   0x8   :  { %306 = dma.done.wait [#allocation3], 16  }
   0x9   :  { %307 = vsyncadd [#allocation3], 4294967280 }
   0xa   :  { %308 = dma.done.wait [#allocation6], 128  }
   0xb   :  { %309 = vsyncadd [#allocation6], 4294967168  ;;  %v40_v0 = vld [vmem:[#allocation5] sm:$0xff]  ;;  %v233_v1 = vld [vmem:[#allocation2] ss:$0 sm:$0xff]  ;;  %s321_s0 = smov [#allocation7]  }
   0xc   :  { %v343_v2 = vmul.f32 %v233_v1, %v40_v0  ;;  %v314_v14 = vmov 683565275   ;;  %v315_v16 = vmov 2475754826   ;;  %v316_v18 = vmov 2131351028  }
   0xd   :  { %v317_v20 = vmov 2102212464   ;;  %v318_v22 = vmov 920167782   ;;  %v319_v28 = vmov 1326507024  }
   0xe   :  { %v49_v3 = vand.u32 2139095040, %v343_v2  ;;  %v46_v5 = vand.u32 2147483647, %v343_v2  ;;  %vm48_vm12 = vcmp.lt.s32.totalorder %v343_v2, 0  ;;  %s207_s1 = sshll.u32 %s321_s0, 4  ;;  %s209_s21 = sshll.u32 %s394_s2, 4  ;;  %s208_s1 = int_to_ptr.vmem [resolvable:$true] %s207_s1  ;;  %s210_s21 = int_to_ptr.hbm [resolvable:$true] %s209_s21 }
  0x10   :  { %v50_v4 = vshrl.u32 %v49_v3, 23  ;;  %v53_v8 = vand.u32 8388607, %v46_v5  ;;  %v320_v3 = vmov 0   ;;  %vm47_vm13 = vcmp.le.f32.partialorder %v46_v5, 0.7853982 }
  0x12   :  { %v220_v6 = vadd.s32 4294967169, %v50_v4  ;;  %v54_v11 = vor.u32 8388608, %v53_v8 }
  0x14   :  { %v56_v7 = vadd.s32 1, %v220_v6  ;;  %v352_v30 = vshll.u32 %v54_v11, 8 }
  0x16   :  { %vm57_vm0 = vcmp.gt.s32.totalorder %v56_v7, 0  ;;  %v95_v42 = vand.u32 65535, %v352_v30  ;;  %v96_v43 = vshrl.u32 %v352_v30, 16 }
  0x17   :  { %v58_v9 = vsel %vm57_vm0, %v56_v7, 0 }
  0x18   :  { %v60_v10 = vand.u32 31, %v58_v9  ;;  %v349_v12 = vshrl.u32 %v58_v9, 5 }
  0x1a   :  { %v61_v13 = vsub.s32 32, %v60_v10  ;;  %v63_v15 = vshll.u32 %v314_v14, %v60_v10  ;;  %v66_v17 = vshll.u32 %v315_v16, %v60_v10  ;;  %v69_v19 = vshll.u32 %v316_v18, %v60_v10 }
  0x1b   :  { %v72_v21 = vshll.u32 %v317_v20, %v60_v10  ;;  %v75_v23 = vshll.u32 %v318_v22, %v60_v10  ;;  %vm78_vm1 = vcmp.lt.s32.totalorder %v349_v12, 1  ;;  %vm81_vm2 = vcmp.lt.s32.totalorder %v349_v12, 4 }
  0x1c   :  { %v64_v24 = vshrl.u32 %v315_v16, %v61_v13  ;;  %v67_v25 = vshrl.u32 %v316_v18, %v61_v13  ;;  %v70_v26 = vshrl.u32 %v317_v20, %v61_v13  ;;  %v73_v27 = vshrl.u32 %v318_v22, %v61_v13 }
  0x1d   :  { %v76_v29 = vshrl.u32 %v319_v28, %v61_v13  ;;  %vm80_vm3 = vcmp.lt.s32.totalorder %v349_v12, 3  ;;  %vm79_vm4 = vcmp.lt.s32.totalorder %v349_v12, 2  ;;  %v62_v50 = vshrl.u32 %v314_v14, %v61_v13 }
  0x1e   :  { %v65_v31 = vor.u32 %v64_v24, %v63_v15  ;;  %v68_v32 = vor.u32 %v67_v25, %v66_v17  ;;  %v71_v33 = vor.u32 %v70_v26, %v69_v19  ;;  %v74_v34 = vor.u32 %v73_v27, %v72_v21 }
  0x1f   :  { %v77_v35 = vor.u32 %v76_v29, %v75_v23 }
  0x20   :  { %v86_v36 = vsel %vm78_vm1, %v65_v31, %v68_v32  ;;  %v90_v37 = vsel %vm78_vm1, %v68_v32, %v71_v33  ;;  %v87_v38 = vsel %vm81_vm2, %v74_v34, 920167782  ;;  %v82_v63 = vsel %vm78_vm1, %v62_v50, %v65_v31 }
  0x21   :  { %v91_v39 = vsel %vm81_vm2, %v77_v35, 1326507024  ;;  %v88_v40 = vsel %vm80_vm3, %v71_v33, %v87_v38  ;;  %v83_v1 = vsel %vm81_vm2, %v71_v33, 2102212464  ;;  %vm189_vm1 = vweird.f32 %v343_v2 }
  0x22   :  { %v92_v41 = vsel %vm80_vm3, %v74_v34, %v91_v39  ;;  %v89_v44 = vsel %vm79_vm4, %v86_v36, %v88_v40  ;;  %v84_v14 = vsel %vm80_vm3, %v68_v32, %v83_v1 }
  0x23   :  { %v93_v45 = vsel %vm79_vm4, %v90_v37, %v92_v41  ;;  %v119_v48 = vand.u32 65535, %v89_v44  ;;  %v120_v49 = vshrl.u32 %v89_v44, 16  ;;  %v85_v22 = vsel %vm79_vm4, %v82_v63, %v84_v14 }
  0x24   :  { %v97_v46 = vand.u32 65535, %v93_v45  ;;  %v98_v47 = vshrl.u32 %v93_v45, 16  ;;  %v139_v26 = vmul.u32 %v352_v30, %v85_v22 }
  0x25   :  { %v121_v54 = vmul.u32 %v119_v48, %v95_v42  ;;  %v122_v55 = vmul.u32 %v120_v49, %v95_v42  ;;  %v123_v56 = vmul.u32 %v119_v48, %v96_v43  ;;  %v124_v60 = vmul.u32 %v120_v49, %v96_v43 }
  0x26   :  { %v99_v51 = vmul.u32 %v97_v46, %v95_v42  ;;  %v100_v52 = vmul.u32 %v98_v47, %v95_v42  ;;  %v101_v53 = vmul.u32 %v97_v46, %v96_v43  ;;  %v102_v57 = vmul.u32 %v98_v47, %v96_v43 }
  0x27   :  { %v125_v61 = vshll.u32 %v122_v55, 16  ;;  %v127_v62 = vshll.u32 %v123_v56, 16  ;;  %v126_v11 = vshrl.u32 %v122_v55, 16  ;;  %v128_v18 = vshrl.u32 %v123_v56, 16 }
  0x28   :  { %v103_v58 = vshll.u32 %v100_v52, 16  ;;  %v105_v59 = vshll.u32 %v101_v53, 16  ;;  %v104_v7 = vshrl.u32 %v100_v52, 16  ;;  %v106_v15 = vshrl.u32 %v101_v53, 16 }
  0x29   :  { %vm129_vm6 = vc.u32 %v121_v54, %v125_v61  ;;  %v131_v6 = vadd.s32 %v125_v61, %v121_v54 }
  0x2a   :  { %vm107_vm5 = vc.u32 %v99_v51, %v103_v58  ;;  %v109_v0 = vadd.s32 %v103_v58, %v99_v51  ;;  %v130_v9 = vsel %vm129_vm6, 1, %v320_v3 }
  0x2b   :  { %v108_v4 = vsel %vm107_vm5, 1, %v320_v3  ;;  %v132_v13 = vadd.s32 %v130_v9, %v124_v60  ;;  %vm133_vm8 = vc.u32 %v131_v6, %v127_v62  ;;  %v135_v21 = vadd.s32 %v131_v6, %v127_v62 }
  0x2c   :  { %v110_v8 = vadd.s32 %v108_v4, %v102_v57  ;;  %vm111_vm7 = vc.u32 %v109_v0, %v105_v59  ;;  %v134_v17 = vsel %vm133_vm8, 1, %v320_v3 }
  0x2d   :  { %v112_v10 = vsel %vm111_vm7, 1, %v320_v3  ;;  %v136_v19 = vadd.s32 %v134_v17, %v132_v13 }
  0x2e   :  { %v114_v16 = vadd.s32 %v112_v10, %v110_v8 }
  0x2f   :  { %v137_v23 = vadd.s32 %v136_v19, %v126_v11 }
  0x30   :  { %v115_v20 = vadd.s32 %v114_v16, %v104_v7 }
  0x31   :  { %v138_v25 = vadd.s32 %v137_v23, %v128_v18 }
  0x32   :  { %v116_v24 = vadd.s32 %v115_v20, %v106_v15 }
  0x33   :  { %v142_v27 = vadd.s32 1, %v138_v25 }
  0x34   :  { %vm141_vm9 = vc.u32 %v116_v24, %v135_v21  ;;  %v140_v12 = vadd.s32 %v135_v21, %v116_v24 }
  0x35   :  { %v143_v28 = vsel %vm141_vm9, %v142_v27, %v138_v25 }
  0x36   :  { %v144_v29 = vadd.s32 %v143_v28, %v139_v26 }
  0x38   :  { %v145_v31 = vadd.s32 536870912, %v144_v29 }
  0x3a   :  { %v146_v32 = vshrl.u32 %v145_v31, 30 }
  0x3c   :  { %v147_v33 = vshll.u32 %v146_v32, 30  ;;  %v170_v50 = vsub.s32 4, %v146_v32 }
  0x3e   :  { %v148_v34 = vsub.s32 %v144_v29, %v147_v33  ;;  %v171_v53 = vsel %vm48_vm12, %v170_v50, %v146_v32 }
  0x3f   :  { %v173_v56 = vsel %vm47_vm13, 0, %v171_v53 }
  0x40   :  { %vm149_vm10 = vcmp.lt.s32.totalorder %v148_v34, 0  ;;  %v150_v35 = vsub.s32 0, %v148_v34  ;;  %v190_v61 = vadd.s32 3, %v173_v56 }
  0x42   :  { %v151_v36 = vsel %vm149_vm10, %v150_v35, %v148_v34  ;;  %v191_v3 = vand.u32 3, %v190_v61 }
  0x43   :  { %v152_v37 = vclz %v151_v36 }
  0x44   :  { %vm196_vm14 = vcmp.eq.s32.totalorder %v191_v3, 2  ;;  %vm193_vm15 = vcmp.eq.s32.totalorder %v191_v3, 0  ;;  %vm192_vm0 = vcmp.lt.s32.totalorder %v191_v3, 2 }
  0x45   :  { %v221_v38 = vadd.s32 4294967294, %v152_v37 }
  0x47   :  { %vm222_vm11 = vcmp.lt.s32.totalorder %v221_v38, 0 }
  0x48   :  { %v155_v39 = vsel %vm222_vm11, 0, %v221_v38 }
  0x49   :  { %v156_v40 = vsub.s32 32, %v155_v39  ;;  %v157_v41 = vshll.u32 %v148_v34, %v155_v39  ;;  %v160_v42 = vsub.s32 4294967266, %v155_v39 }
  0x4b   :  { %v158_v30 = vshrl.u32 %v140_v12, %v156_v40  ;;  %v161_v43 = vadd.s32 127, %v160_v42 }
  0x4d   :  { %v159_v44 = vor.u32 %v158_v30, %v157_v41  ;;  %v162_v45 = vshll.u32 %v161_v43, 23 }
  0x4f   :  { %v163_v46 = vor.u32 4788187, %v162_v45  ;;  %v166_v47 = vcvt.s32.f32 %v159_v44 }
  0x51   :  { %v164_v48 = vand.u32 2147483647, %v163_v46 }
  0x53   :  { %v167_v49 = vmul.f32 %v166_v47, %v164_v48 }
  0x55   :  { %v168_v51 = vxor.u32 2147483648, %v167_v49 }
  0x57   :  { %v169_v52 = vsel %vm48_vm12, %v168_v51, %v167_v49 }
  0x58   :  { %v172_v54 = vsel %vm47_vm13, %v343_v2, %v169_v52 }
  0x59   :  { %v174_v55 = vmul.f32 %v172_v54, %v172_v54 }
  0x5b   :  { %v175_v57 = vmul.f32 -0.001358992, %v174_v55  ;;  %v182_v58 = vmul.f32 -0.00019511016, %v174_v55 }
  0x5d   :  { %v176_v59 = vadd.f32 0.041655596, %v175_v57  ;;  %v183_v60 = vadd.f32 0.008332121, %v182_v58 }
  0x5f   :  { %v177_v62 = vmul.f32 %v176_v59, %v174_v55  ;;  %v184_v63 = vmul.f32 %v183_v60, %v174_v55 }
  0x61   :  { %v178_v0 = vadd.f32 -0.4999988, %v177_v62  ;;  %v185_v1 = vadd.f32 -0.16666654, %v184_v63 }
  0x63   :  { %v179_v4 = vmul.f32 %v178_v0, %v174_v55  ;;  %v186_v6 = vmul.f32 %v185_v1, %v174_v55 }
  0x65   :  { %v180_v5 = vadd.f32 1.0, %v179_v4  ;;  %v187_v7 = vadd.f32 1.0, %v186_v6 }
  0x67   :  { %v188_v8 = vmul.f32 %v187_v7, %v172_v54  ;;  %v197_v9 = vxor.u32 2147483648, %v180_v5 }
  0x69   :  { %v194_v10 = vxor.u32 2147483648, %v188_v8  ;;  %v198_v11 = vsel %vm196_vm14, %v197_v9, %v188_v8 }
  0x6b   :  { %v195_v13 = vsel %vm193_vm15, %v180_v5, %v194_v10 }
  0x6c   :  { %v199_v14 = vsel %vm192_vm0, %v195_v13, %v198_v11 }
  0x6d   :  { %v200_v15 = vsel %vm189_vm1, nan, %v199_v14 }
  0x6e   :  { %201 = vst [vmem:[#allocation7] sm:$0xff] %v200_v15 }
  0x6f   :  { %212 = dma.vmem_to_hbm [thread:$0]  %s208_s1, 128, %s210_s21, [#allocation4]  }
  0x70   :  { %310 = dma.done.wait [#allocation4], 128  }
  0x71   :  { %311 = vsyncadd [#allocation4], 4294967168 }
  0x72   :  { %217 = vsyncpa [#allocation3], 1 }
  0x73   :  { %218 = vsyncpa [#allocation6], 1 }
  0x74   :  { %219 = vsyncpa [#allocation4], 1 }

</bundles_post_ra>
